<compile_context>
chip_gen: v7x
topology: tpu7x:2x2x1
jax: 0.10.0
libtpu: 0.0.40
codegen_flags: <defaults>
</compile_context>

<pallas_src>
import functools

import numpy as np
import jax
import jax.numpy as jnp
from jax.experimental import pallas as pl
from jax.experimental.pallas import tpu as pltpu

# ----------------------------- hyper-params ---------------------------------
MAX_SEQ_LEN = 8
EMBED_DIM = 32
BATCH = 2


# ------------------------------ PE buffer -----------------------------------
def make_sinusoidal_pe(max_seq_len: int, embed_dim: int) -> jnp.ndarray:
    """Reproduces the PyTorch double loop exactly:
         pe[pos, i]   = sin(pos / 10000 ** (2*i/embed_dim))
         pe[pos, i+1] = cos(pos / 10000 ** (2*i/embed_dim))
    """
    pos = np.arange(max_seq_len, dtype=np.float64)[:, None]          # (S, 1)
    i = np.arange(0, embed_dim, 2, dtype=np.float64)[None, :]        # (1, D/2)
    denom = 10000.0 ** (2.0 * i / embed_dim)                         # (1, D/2)
    angles = pos / denom                                             # (S, D/2)
    pe = np.zeros((max_seq_len, embed_dim), np.float32)
    pe[:, 0::2] = np.sin(angles)
    pe[:, 1::2] = np.cos(angles)
    return jnp.asarray(pe)


# -------------------------------- kernel ------------------------------------
def pos_embed_kernel(x_ref, pe_ref, out_ref, *, sqrt_d):
    # x_ref:  (B, S*D)   lane-dense activation slab   (or (B,S,D) fallback)
    # pe_ref: (1, S*D)   PE row, broadcast over batch (or (1,S,D) fallback)
    # out = x + sqrt(embed_dim) + pe     -- exactly the PyTorch forward.
    out_ref[...] = x_ref[...] + (pe_ref[...] + sqrt_d)


# ------------------------------- wrapper -------------------------------------
_VMEM = pl.BlockSpec(memory_space=pltpu.MemorySpace.VMEM)


def positional_embedding(x: jnp.ndarray, pe: jnp.ndarray) -> jnp.ndarray:
    """x: (B, S, D) float32; pe: (max_seq_len, D) float32.

    Returns x + sqrt(D) + pe[:S], identical to the PyTorch module's forward.
    """
    B, S, D = x.shape
    pe_s = pe[:S]                                   # seq_len = x.size(1)
    sqrt_d = float(np.sqrt(float(D)))
    kern = functools.partial(pos_embed_kernel, sqrt_d=sqrt_d)

    if (S * D) % 128 == 0:
        # Lane-dense path: flatten (S, D) onto the 128-lane axis so every
        # load/store is a full-width unmasked vector op.
        x2 = x.reshape(B, S * D)
        pe2 = pe_s.reshape(1, S * D)
        out2 = pl.pallas_call(
            kern,
            out_shape=jax.ShapeDtypeStruct((B, S * D), x.dtype),
            in_specs=[_VMEM, _VMEM],
            out_specs=_VMEM,
        )(x2, pe2)
        return out2.reshape(B, S, D)

    # Generic fallback (correct, possibly masked stores for small D).
    out = pl.pallas_call(
        kern,
        out_shape=jax.ShapeDtypeStruct((B, S, D), x.dtype),
        in_specs=[_VMEM, _VMEM],
        out_specs=_VMEM,
    )(x, pe_s[None, :, :])
    return out


# --------------------------------- main --------------------------------------
if __name__ == "__main__":
    key = jax.random.PRNGKey(0)
    x = jax.random.normal(key, (BATCH, MAX_SEQ_LEN, EMBED_DIM), jnp.float32)
    pe = make_sinusoidal_pe(MAX_SEQ_LEN, EMBED_DIM)

    out = positional_embedding(x, pe)
    out = jax.block_until_ready(out)

    # pure-JAX reference of the PyTorch forward
    ref = x + jnp.float32(np.sqrt(float(EMBED_DIM))) + pe[:MAX_SEQ_LEN][None, :, :]

    assert out.shape == (BATCH, MAX_SEQ_LEN, EMBED_DIM)
    assert bool(jnp.all(jnp.isfinite(out)))
    assert bool(jnp.allclose(out, ref, atol=1e-6, rtol=1e-6))
    print("KERNEL_OK")
</pallas_src>

<mosaic_0001>
module attributes {stable_mosaic.version = 11 : i64} {
  func.func @pos_embed_kernel(%arg0: memref<2x256xf32, #tpu.memory_space<vmem>>, %arg1: memref<1x256xf32, #tpu.memory_space<vmem>>, %arg2: memref<2x256xf32, #tpu.memory_space<vmem>>) attributes {dimension_semantics = [], scalar_prefetch = 0 : i64, scratch_operands = 0 : i64, tpu.core_type = #tpu.core_type<tc>} {
    %c0 = arith.constant 0 : index
    %c0_0 = arith.constant 0 : index
    %0 = vector.load %arg0[%c0, %c0_0] : memref<2x256xf32, #tpu.memory_space<vmem>>, vector<2x256xf32>
    %c0_1 = arith.constant 0 : index
    %c0_2 = arith.constant 0 : index
    %1 = vector.load %arg1[%c0_1, %c0_2] : memref<1x256xf32, #tpu.memory_space<vmem>>, vector<1x256xf32>
    %cst = arith.constant 5.65685415 : f32
    %2 = vector.broadcast %cst : f32 to vector<1x256xf32>
    %3 = arith.addf %1, %2 : vector<1x256xf32>
    %4 = vector.broadcast %3 : vector<1x256xf32> to vector<2x256xf32>
    %5 = arith.addf %0, %4 : vector<2x256xf32>
    %c0_3 = arith.constant 0 : index
    %c0_4 = arith.constant 0 : index
    %6 = vector.load %arg2[%c0_3, %c0_4] : memref<2x256xf32, #tpu.memory_space<vmem>>, vector<2x256xf32>
    tpu.vector_store %arg2[%c0_3, %c0_4], %5 {strides = array<i32>} : memref<2x256xf32, #tpu.memory_space<vmem>>, vector<2x256xf32>,
    return
  }
}

</mosaic_0001>

<bundles_post_ra>
// kernel: tpu_custom_call.1
= control target key start
LH: loop header
LB: loop body
LE: loop exit
PB: predicated region body
PF: predicated region fallthrough
CT: control target
= control target key end

     0   :  { %7 = vsyncpa [#allocation3], 0  ;;  %s158_s0 = inlined_call_operand.hbm [shape: f32[2,256], index: 0, kind: input, shape index: {}]   ;;  %s159_s1 = inlined_call_operand.vmem [shape: f32[1,256], index: 1, kind: input, shape index: {}]   ;;  %s160_s2 = inlined_call_operand.hbm [shape: f32[2,256], index: 2, kind: output, shape index: {}]  }
   0x1   :  { %8 = vsyncpa [#allocation4], 0  ;;  %s113_s9 = smov [#allocation2]   ;;  %s65_s13 = scalar_lea.hbm %s158_s0, 64 }
   0x2   :  { %s15_s10 = sshll.u32 %s113_s9, 4  ;;  %p66_p0 = scmp.ne.s32.totalorder %s158_s0, %s65_s13  ;;  %s16_s10 = int_to_ptr.vmem [resolvable:$true] %s15_s10 }
   0x3   :  { %p69_p1 = scmp.lt.u32.totalorder %s65_s13, %s158_s0 }
   0x5   :  { %p71_p2 = pnand %p69_p1, %p66_p0 }
   0x7   :  { %74 = shalt.err (!%p71_p2)
}
   0x8   :  { %s75_s18 = scalar_lea.vmem %s16_s10, 64  ;;  %p80_p4 = scmp.lt.s32.totalorder %s16_s10, %s16_s10 }
   0x9   :  { %p76_p3 = scmp.ne.s32.totalorder %s16_s10, %s75_s18  ;;  %p81_p5 = scmp.lt.s32.totalorder %s75_s18, %s75_s18 }
   0xb   :  { %p82_p6 = por %p81_p5, %p80_p4 }
   0xd   :  { %p83_p7 = pnand %p82_p6, %p76_p3 }
   0xf   :  { %86 = shalt.err (!%p83_p7)
}
  0x10   :  { %18 = dma.hbm_to_vmem [thread:$0]  %s158_s0, 64, %s16_s10, [#allocation3]  }
  0x11   :  { %109 = dma.done.wait [#allocation3], 64  }
  0x12   :  { %110 = vsyncadd [#allocation3], 4294967232  ;;  %v28_v0 = vlaneseq  ;;  %v114_v2 = vmov 1983009808   ;;  %v25_v7 = vld [vmem:[%s159_s1] sm:$0x3] }
  0x13   :  { %v38_v3 = vunpack.c.l.s4 %v114_v2  ;;  %v26_v8 = vadd.f32 5.656854, %v25_v7  ;;  %v24_v13 = vld [vmem:[#allocation2] sm:$0xf]  ;;  %s115_s0 = smov [#allocation5]  }
  0x14   :  { %v29_v1 = vshrl.u32 %v28_v0, 7  ;;  %s53_s23 = sshll.u32 %s115_s0, 4  ;;  %s54_s23 = int_to_ptr.vmem [resolvable:$true] %s53_s23 }
  0x15   :  { %v39_v6 = vunpack.c.0.s8 %v38_v3  ;;  %s87_s24 = scalar_lea.vmem %s54_s23, 64  ;;  %p92_p9 = scmp.lt.s32.totalorder %s54_s23, %s54_s23 }
  0x16   :  { %v30_v4 = vsub.s32 0, %v29_v1  ;;  %v34_v5 = vsub.s32 1, %v29_v1  ;;  %p88_p8 = scmp.ne.s32.totalorder %s54_s23, %s87_s24  ;;  %p93_p10 = scmp.lt.s32.totalorder %s87_s24, %s87_s24 }
  0x17   :  { %v42_v11 = vsub.s32 %v39_v6, %v29_v1 }
  0x18   :  { %v31_v9 = vrot.slane %v26_v8, %v30_v4  ;;  %v35_v10 = vrot.slane %v26_v8, %v34_v5  ;;  %p94_p11 = por %p93_p10, %p92_p9 }
  0x1a   :  { %v36_v12 = vcombine.low %v31_v9, %v35_v10  ;;  %p95_p12 = pnand %p94_p11, %p88_p8 }
  0x1c   :  { %v43_v14 = vrot.slane %v36_v12, %v42_v11 }
  0x1e   :  { %v45_v15 = vadd.f32 %v43_v14, %v24_v13 }
  0x20   :  { %46 = vst [vmem:[#allocation5] sm:$0xf] %v45_v15 }
  0x21   :  { %98 = shalt.err (!%p95_p12)
}
  0x22   :  { %s99_s26 = scalar_lea.hbm %s160_s2, 64 }
  0x23   :  { %p100_p13 = scmp.ne.s32.totalorder %s160_s2, %s99_s26  ;;  %p103_p0 = scmp.lt.u32.totalorder %s99_s26, %s160_s2 }
  0x25   :  { %p105_p1 = pnand %p103_p0, %p100_p13 }
  0x27   :  { %108 = shalt.err (!%p105_p1)
}
  0x28   :  { %56 = dma.vmem_to_hbm [thread:$0]  %s54_s23, 64, %s160_s2, [#allocation4]  }
  0x29   :  { %111 = dma.done.wait [#allocation4], 64  }
  0x2a   :  { %112 = vsyncadd [#allocation4], 4294967232 }
  0x2b   :  { %60 = vsyncpa [#allocation3], 1 }
  0x2c   :  { %61 = vsyncpa [#allocation4], 1 }

</bundles_post_ra>
